<compile_context>
chip_gen: v7x
topology: tpu7x:2x2x1
jax: 0.10.0
libtpu: 0.0.40
codegen_flags: <defaults>
</compile_context>

<pallas_src>
import jax
import jax.numpy as jnp
from jax.experimental import pallas as pl
from jax.experimental.pallas import tpu as pltpu

IN_FEATURES = 18
HIDDEN = 128        # 100 padded to one MXU lane tile
OUT_PAD = 128       # 4 logits padded to a lane-dense store
NUM_CLASSES = 4


def mlp_kernel(x_ref, w1_ref, wh_ref, b_ref, out_ref):
    """Fused 4-layer MLP on one (TM, 18) bf16 batch tile. Weights/biases VMEM-resident.

    x_ref : (TM, 18)      bf16
    w1_ref: (18, 128)     bf16
    wh_ref: (3, 128, 128) bf16   rows = [w2, w3, w4]
    b_ref : (8, 128)      f32    rows 0..3 = [b1, b2, b3, b4]
    out   : (TM, 128)     bf16   padded logits (cols 4..127 are zero)
    """
    x = x_ref[...]  # already bf16

    # Layer 1: Linear(18, 100->128) + ReLU   (f32 MXU accumulation, f32 bias/ReLU)
    h = jnp.dot(x, w1_ref[...], preferred_element_type=jnp.float32) + b_ref[0:1, :]
    h = jnp.maximum(h, 0.0)

    # Layer 2: Linear(100->128, 100->128) + ReLU
    h = jnp.dot(h.astype(jnp.bfloat16), wh_ref[0],
                preferred_element_type=jnp.float32) + b_ref[1:2, :]
    h = jnp.maximum(h, 0.0)

    # Layer 3: Linear(100->128, 100->128) + Dropout + ReLU
    # Dropout is identity at inference.
    # TODO(synk): training-mode dropout (pltpu.prng_seed / prng_random_bits) not implemented.
    h = jnp.dot(h.astype(jnp.bfloat16), wh_ref[1],
                preferred_element_type=jnp.float32) + b_ref[2:3, :]
    h = jnp.maximum(h, 0.0)

    # Layer 4: Linear(100->128, 4->128) -> padded logits, stored bf16.
    out = jnp.dot(h.astype(jnp.bfloat16), wh_ref[2],
                  preferred_element_type=jnp.float32) + b_ref[3:4, :]
    out_ref[...] = out.astype(out_ref.dtype)


def phone_price_classifier(x, params, *, tm=2048):
    """x: (B, 18) float32.  params: zero-padded, fused weights/biases (see init_params)."""
    B = x.shape[0]

    # Cast the input once in HBM: halves the input read and the x VMEM tile footprint.
    x = x.astype(jnp.bfloat16)

    # Row tile: multiple of 8 (sublane), capped at `tm`.
    TM = min(tm, max(8, ((B + 7) // 8) * 8))
    # v7x megacore: make sure there are >= 2 grid steps to shard across the 2 TCs
    # whenever the batch is big enough to split (no-op on v5e/v6e single-TC chips).
    if B >= 16:
        half = max(8, (((B + 1) // 2) + 7) // 8 * 8)
        TM = min(TM, half)
    B_pad = pl.cdiv(B, TM) * TM
    if B_pad != B:
        x = jnp.pad(x, ((0, B_pad - B), (0, 0)))

    w1, wh, b = params["w1"], params["w_hidden"], params["b"]

    # Weights / biases: full-array block, constant index map -> fetched once, VMEM-resident.
    def resident(a):
        return pl.BlockSpec(a.shape, lambda i, n=a.ndim: (0,) * n)

    flops = 2 * B_pad * (IN_FEATURES * HIDDEN + 2 * HIDDEN * HIDDEN + HIDDEN * OUT_PAD)
    weight_bytes = int(w1.size) * 2 + int(wh.size) * 2 + int(b.size) * 4
    bytes_accessed = B_pad * IN_FEATURES * 2 + B_pad * OUT_PAD * 2 + weight_bytes

    # Only raise the scoped-VMEM limit when the tile is swept very large; the default
    # TM=2048 fits the 16 MiB (v5e) / 32 MiB (v6e/v7x) scoped defaults comfortably.
    vmem_limit = None
    if TM >= 4096:
        est = 2 * 2 * (TM * 128 * 2)      # double-buffered bf16 x and out tiles (lane-padded)
        est += 4 * TM * 128 * 4           # f32 layer intermediates
        est += 4 << 20                    # weights, biases, headroom
        vmem_limit = min(est, 96 << 20)

    out = pl.pallas_call(
        mlp_kernel,
        out_shape=jax.ShapeDtypeStruct((B_pad, OUT_PAD), jnp.bfloat16),
        grid=(B_pad // TM,),
        in_specs=[
            pl.BlockSpec((TM, IN_FEATURES), lambda i: (i, 0)),
            resident(w1), resident(wh), resident(b),
        ],
        out_specs=pl.BlockSpec((TM, OUT_PAD), lambda i: (i, 0)),
        compiler_params=pltpu.CompilerParams(
            dimension_semantics=("parallel",),
            vmem_limit_bytes=vmem_limit),
        cost_estimate=pl.CostEstimate(flops=flops, transcendentals=0,
                                      bytes_accessed=bytes_accessed),
    )(x, w1, wh, b)

    # Strip batch padding and the padded logit lanes; return f32 logits.
    return out[:B, :NUM_CLASSES].astype(jnp.float32)


def init_params(key):
    """nn.Linear-style init at true shapes, then zero-pad to MXU-friendly shapes.

    Weights stored transposed ((in, out)) in bf16; w2/w3/w4 stacked into one
    (3, 128, 128) array; the four biases fused into one (8, 128) f32 array
    (rows 0..3 = b1..b4). Zero padding keeps padded lanes exactly zero through
    ReLU and the final layer.
    """
    true_dims = [(IN_FEATURES, 100), (100, 100), (100, 100), (100, NUM_CLASSES)]
    pad_dims = [(IN_FEATURES, HIDDEN), (HIDDEN, HIDDEN), (HIDDEN, HIDDEN), (HIDDEN, OUT_PAD)]
    ws, bs = [], []
    for (fi, fo), (pi, po) in zip(true_dims, pad_dims):
        key, kw, kb = jax.random.split(key, 3)
        bound = 1.0 / float(fi) ** 0.5
        w = jax.random.uniform(kw, (fi, fo), jnp.float32, -bound, bound)
        b = jax.random.uniform(kb, (fo,), jnp.float32, -bound, bound)
        ws.append(jnp.pad(w, ((0, pi - fi), (0, po - fo))).astype(jnp.bfloat16))
        bs.append(jnp.pad(b, (0, po - fo)))
    b_all = jnp.zeros((8, HIDDEN), jnp.float32).at[0:4, :].set(jnp.stack(bs))
    return {
        "w1": ws[0],                       # (18, 128)      bf16
        "w_hidden": jnp.stack(ws[1:]),     # (3, 128, 128)  bf16
        "b": b_all,                        # (8, 128)       f32
    }


if __name__ == "__main__":
    key = jax.random.PRNGKey(0)
    key, xkey = jax.random.split(key)

    batch = 8
    x = jax.random.normal(xkey, (batch, IN_FEATURES), dtype=jnp.float32)
    params = init_params(key)

    logits = phone_price_classifier(x, params)
    jax.block_until_ready(logits)

    assert logits.shape == (batch, NUM_CLASSES)
    assert logits.dtype == jnp.float32
    print("KERNEL_OK")
</pallas_src>

<mosaic_0001>
module attributes {stable_mosaic.version = 11 : i64} {
  func.func @mlp_kernel(%arg0: i32, %arg1: memref<8x18xbf16, #tpu.memory_space<vmem>>, %arg2: memref<18x128xbf16, #tpu.memory_space<vmem>>, %arg3: memref<3x128x128xbf16, #tpu.memory_space<vmem>>, %arg4: memref<8x128xf32, #tpu.memory_space<vmem>>, %arg5: memref<8x128xbf16, #tpu.memory_space<vmem>>) attributes {dimension_semantics = [#tpu.dimension_semantics<parallel>], iteration_bounds = array<i64: 1>, scalar_prefetch = 0 : i64, scratch_operands = 0 : i64, tpu.core_type = #tpu.core_type<tc>, window_params = [{transform_indices = @transform_0, window_bounds = array<i64: 8, 18>}, {pipeline_mode = #tpu.pipeline_mode<synchronous>, transform_indices = @transform_1, window_bounds = array<i64: 18, 128>}, {pipeline_mode = #tpu.pipeline_mode<synchronous>, transform_indices = @transform_2, window_bounds = array<i64: 3, 128, 128>}, {pipeline_mode = #tpu.pipeline_mode<synchronous>, transform_indices = @transform_3, window_bounds = array<i64: 8, 128>}, {transform_indices = @transform_4, window_bounds = array<i64: 8, 128>}]} {
    %c0 = arith.constant 0 : index
    %c0_0 = arith.constant 0 : index
    %0 = vector.load %arg1[%c0, %c0_0] : memref<8x18xbf16, #tpu.memory_space<vmem>>, vector<8x18xbf16>
    %c0_1 = arith.constant 0 : index
    %c0_2 = arith.constant 0 : index
    %1 = vector.load %arg2[%c0_1, %c0_2] : memref<18x128xbf16, #tpu.memory_space<vmem>>, vector<18x128xbf16>
    %cst = arith.constant dense<0.000000e+00> : vector<8x128xf32>
    %2 = tpu.matmul %0, %1, %cst {dimension_numbers = #tpu.dot_dimension_numbers<[1], [0], [0], [1], [0, 0, 1, 1], [], []>} : vector<8x18xbf16>, vector<18x128xbf16>, vector<8x128xf32> -> vector<8x128xf32>
    %c0_3 = arith.constant 0 : index
    %c0_4 = arith.constant 0 : index
    %3 = vector.load %arg4[%c0_3, %c0_4] : memref<8x128xf32, #tpu.memory_space<vmem>>, vector<1x128xf32>
    %4 = vector.broadcast %3 : vector<1x128xf32> to vector<8x128xf32>
    %5 = arith.addf %2, %4 : vector<8x128xf32>
    %cst_5 = arith.constant 0.000000e+00 : f32
    %6 = vector.broadcast %cst_5 : f32 to vector<8x128xf32>
    %7 = arith.maximumf %5, %6 : vector<8x128xf32>
    %8 = arith.truncf %7 : vector<8x128xf32> to vector<8x128xbf16>
    %c0_6 = arith.constant 0 : index
    %c0_7 = arith.constant 0 : index
    %c0_8 = arith.constant 0 : index
    %9 = vector.load %arg3[%c0_6, %c0_7, %c0_8] : memref<3x128x128xbf16, #tpu.memory_space<vmem>>, vector<1x128x128xbf16>
    %10 = vector.shape_cast %9 : vector<1x128x128xbf16> to vector<128x128xbf16>
    %cst_9 = arith.constant dense<0.000000e+00> : vector<8x128xf32>
    %11 = tpu.matmul %8, %10, %cst_9 {dimension_numbers = #tpu.dot_dimension_numbers<[1], [0], [0], [1], [0, 0, 1, 1], [], []>} : vector<8x128xbf16>, vector<128x128xbf16>, vector<8x128xf32> -> vector<8x128xf32>
    %c1 = arith.constant 1 : index
    %c0_10 = arith.constant 0 : index
    %12 = vector.load %arg4[%c1, %c0_10] : memref<8x128xf32, #tpu.memory_space<vmem>>, vector<1x128xf32>
    %13 = vector.broadcast %12 : vector<1x128xf32> to vector<8x128xf32>
    %14 = arith.addf %11, %13 : vector<8x128xf32>
    %cst_11 = arith.constant 0.000000e+00 : f32
    %15 = vector.broadcast %cst_11 : f32 to vector<8x128xf32>
    %16 = arith.maximumf %14, %15 : vector<8x128xf32>
    %17 = arith.truncf %16 : vector<8x128xf32> to vector<8x128xbf16>
    %c1_12 = arith.constant 1 : index
    %c0_13 = arith.constant 0 : index
    %c0_14 = arith.constant 0 : index
    %18 = vector.load %arg3[%c1_12, %c0_13, %c0_14] : memref<3x128x128xbf16, #tpu.memory_space<vmem>>, vector<1x128x128xbf16>
    %19 = vector.shape_cast %18 : vector<1x128x128xbf16> to vector<128x128xbf16>
    %cst_15 = arith.constant dense<0.000000e+00> : vector<8x128xf32>
    %20 = tpu.matmul %17, %19, %cst_15 {dimension_numbers = #tpu.dot_dimension_numbers<[1], [0], [0], [1], [0, 0, 1, 1], [], []>} : vector<8x128xbf16>, vector<128x128xbf16>, vector<8x128xf32> -> vector<8x128xf32>
    %c2 = arith.constant 2 : index
    %c0_16 = arith.constant 0 : index
    %21 = vector.load %arg4[%c2, %c0_16] : memref<8x128xf32, #tpu.memory_space<vmem>>, vector<1x128xf32>
    %22 = vector.broadcast %21 : vector<1x128xf32> to vector<8x128xf32>
    %23 = arith.addf %20, %22 : vector<8x128xf32>
    %cst_17 = arith.constant 0.000000e+00 : f32
    %24 = vector.broadcast %cst_17 : f32 to vector<8x128xf32>
    %25 = arith.maximumf %23, %24 : vector<8x128xf32>
    %26 = arith.truncf %25 : vector<8x128xf32> to vector<8x128xbf16>
    %c2_18 = arith.constant 2 : index
    %c0_19 = arith.constant 0 : index
    %c0_20 = arith.constant 0 : index
    %27 = vector.load %arg3[%c2_18, %c0_19, %c0_20] : memref<3x128x128xbf16, #tpu.memory_space<vmem>>, vector<1x128x128xbf16>
    %28 = vector.shape_cast %27 : vector<1x128x128xbf16> to vector<128x128xbf16>
    %cst_21 = arith.constant dense<0.000000e+00> : vector<8x128xf32>
    %29 = tpu.matmul %26, %28, %cst_21 {dimension_numbers = #tpu.dot_dimension_numbers<[1], [0], [0], [1], [0, 0, 1, 1], [], []>} : vector<8x128xbf16>, vector<128x128xbf16>, vector<8x128xf32> -> vector<8x128xf32>
    %c3 = arith.constant 3 : index
    %c0_22 = arith.constant 0 : index
    %30 = vector.load %arg4[%c3, %c0_22] : memref<8x128xf32, #tpu.memory_space<vmem>>, vector<1x128xf32>
    %31 = vector.broadcast %30 : vector<1x128xf32> to vector<8x128xf32>
    %32 = arith.addf %29, %31 : vector<8x128xf32>
    %33 = arith.truncf %32 : vector<8x128xf32> to vector<8x128xbf16>
    %c0_23 = arith.constant 0 : index
    %c0_24 = arith.constant 0 : index
    %34 = vector.load %arg5[%c0_23, %c0_24] : memref<8x128xbf16, #tpu.memory_space<vmem>>, vector<8x128xbf16>
    tpu.vector_store %arg5[%c0_23, %c0_24], %33 {strides = array<i32>} : memref<8x128xbf16, #tpu.memory_space<vmem>>, vector<8x128xbf16>,
    return
  }
  func.func @transform_0(%arg0: i32) -> (i32, i32) {
    %c0_i32 = arith.constant 0 : i32
    %c0_i32_0 = arith.constant 0 : i32
    return %arg0, %c0_i32 : i32, i32
  }
  func.func @transform_1(%arg0: i32) -> (i32, i32) {
    %c0_i32 = arith.constant 0 : i32
    %c0_i32_0 = arith.constant 0 : i32
    %c0_i32_1 = arith.constant 0 : i32
    return %c0_i32, %c0_i32_0 : i32, i32
  }
  func.func @transform_2(%arg0: i32) -> (i32, i32, i32) {
    %c0_i32 = arith.constant 0 : i32
    %c0_i32_0 = arith.constant 0 : i32
    %c0_i32_1 = arith.constant 0 : i32
    %c0_i32_2 = arith.constant 0 : i32
    return %c0_i32, %c0_i32_0, %c0_i32_1 : i32, i32, i32
  }
  func.func @transform_3(%arg0: i32) -> (i32, i32) {
    %c0_i32 = arith.constant 0 : i32
    %c0_i32_0 = arith.constant 0 : i32
    %c0_i32_1 = arith.constant 0 : i32
    return %c0_i32, %c0_i32_0 : i32, i32
  }
  func.func @transform_4(%arg0: i32) -> (i32, i32) {
    %c0_i32 = arith.constant 0 : i32
    %c0_i32_0 = arith.constant 0 : i32
    return %arg0, %c0_i32 : i32, i32
  }
}

</mosaic_0001>

<bundles_post_ra>
// kernel: tpu_custom_call.1
= control target key start
LH: loop header
LB: loop body
LE: loop exit
PB: predicated region body
PF: predicated region fallthrough
CT: control target
= control target key end

     0   :  { %9 = vsyncpa [#allocation3], 0  ;;  %s867_s0 = inlined_call_operand.hbm [shape: bf16[8,18], index: 0, kind: input, shape index: {}]   ;;  %s868_s1 = inlined_call_operand.hbm [shape: bf16[18,128], index: 1, kind: input, shape index: {}]   ;;  %s869_s2 = inlined_call_operand.hbm [shape: bf16[3,128,128], index: 2, kind: input, shape index: {}]   ;;  %s870_s3 = inlined_call_operand.vmem [shape: f32[8,128], index: 3, kind: input, shape index: {}]   ;;  %s871_s4 = inlined_call_operand.hbm [shape: bf16[8,128], index: 4, kind: output, shape index: {}]  }
   0x1   :  { %10 = vsyncpa [#allocation6], 0 }
   0x2   :  { %11 = vsyncpa [#allocation4], 0  ;;  %s734_s15 = smov [#allocation5]   ;;  %s640_s19 = scalar_lea.hbm %s868_s1, 192 }
   0x3   :  { %s27_s16 = sshll.u32 %s734_s15, 4  ;;  %p641_p0 = scmp.ne.s32.totalorder %s868_s1, %s640_s19  ;;  %s28_s16 = int_to_ptr.vmem [resolvable:$true] %s27_s16 }
   0x4   :  { %p644_p1 = scmp.lt.u32.totalorder %s640_s19, %s868_s1 }
   0x6   :  { %p646_p2 = pnand %p644_p1, %p641_p0 }
   0x8   :  { %649 = shalt.err (!%p646_p2)
}
   0x9   :  { %s650_s24 = scalar_lea.vmem %s28_s16, 192  ;;  %p655_p4 = scmp.lt.s32.totalorder %s28_s16, %s28_s16 }
   0xa   :  { %p651_p3 = scmp.ne.s32.totalorder %s28_s16, %s650_s24  ;;  %p656_p5 = scmp.lt.s32.totalorder %s650_s24, %s650_s24 }
   0xc   :  { %p657_p6 = por %p656_p5, %p655_p4 }
   0xe   :  { %p658_p7 = pnand %p657_p6, %p651_p3 }
  0x10   :  { %661 = shalt.err (!%p658_p7)
}
  0x11   :  { %s735_s25 = smov 64   ;;  %s736_s26 = smov 4  }
  0x12   :  { %33 = dma.hbm_to_vmem [thread:$0]  %s868_s1, 192, %s28_s16, [#allocation6], %s735_s25, %s735_s25, %s736_s26  }
  0x13   :  { %s737_s29 = smov [#allocation2]   ;;  %s738_s5 = smov [#allocation7]  }
  0x14   :  { %s18_s30 = sshll.u32 %s737_s29, 4  ;;  %s39_s6 = sshll.u32 %s738_s5, 4  ;;  %s19_s30 = int_to_ptr.vmem [resolvable:$true] %s18_s30  ;;  %s40_s6 = int_to_ptr.vmem [resolvable:$true] %s39_s6 }
  0x15   :  { %s662_s9 = scalar_lea.hbm %s867_s0, 64 }
  0x16   :  { %p663_p8 = scmp.ne.s32.totalorder %s867_s0, %s662_s9  ;;  %p666_p9 = scmp.lt.u32.totalorder %s662_s9, %s867_s0 }
  0x18   :  { %p668_p10 = pnand %p666_p9, %p663_p8 }
  0x1a   :  { %671 = shalt.err (!%p668_p10)
}
  0x1b   :  { %s672_s1 = scalar_lea.vmem %s19_s30, 64  ;;  %p677_p12 = scmp.lt.s32.totalorder %s19_s30, %s19_s30 }
  0x1c   :  { %p673_p11 = scmp.ne.s32.totalorder %s19_s30, %s672_s1  ;;  %p678_p13 = scmp.lt.s32.totalorder %s672_s1, %s672_s1 }
  0x1e   :  { %p679_p0 = por %p678_p13, %p677_p12 }
  0x20   :  { %p680_p1 = pnand %p679_p0, %p673_p11 }
  0x22   :  { %683 = shalt.err (!%p680_p1)
}
  0x23   :  { %21 = dma.hbm_to_vmem [thread:$0]  %s867_s0, 64, %s19_s30, [#allocation3]  }
  0x24   :  { %s684_s18 = scalar_lea.hbm %s869_s2, 3072 }
  0x25   :  { %p685_p2 = scmp.ne.s32.totalorder %s869_s2, %s684_s18  ;;  %p688_p3 = scmp.lt.u32.totalorder %s684_s18, %s869_s2 }
  0x27   :  { %p690_p4 = pnand %p688_p3, %p685_p2 }
  0x29   :  { %693 = shalt.err (!%p690_p4)
}
  0x2a   :  { %s694_s23 = scalar_lea.vmem %s40_s6, 3072  ;;  %p699_p6 = scmp.lt.s32.totalorder %s40_s6, %s40_s6 }
  0x2b   :  { %p695_p5 = scmp.ne.s32.totalorder %s40_s6, %s694_s23  ;;  %p700_p7 = scmp.lt.s32.totalorder %s694_s23, %s694_s23 }
  0x2d   :  { %p701_p8 = por %p700_p7, %p699_p6 }
  0x2f   :  { %p702_p9 = pnand %p701_p8, %p695_p5 }
  0x31   :  { %705 = shalt.err (!%p702_p9)
}
  0x32   :  { %45 = dma.hbm_to_vmem [thread:$0]  %s869_s2, 3072, %s40_s6, [#allocation6], %s735_s25, %s735_s25, %s736_s26  }
  0x33   :  { %728 = dma.done.wait [#allocation3], 64  }
  0x34   :  { %729 = vsyncadd [#allocation3], 4294967232 }
  0x35   :  { %730 = dma.done.wait [#allocation6], 3264  }
  0x36   :  { %731 = vsyncadd [#allocation6], 4294964032  ;;  %v739_v0 = vmov 0.0   ;;  %vm740_vm0 = vmmov 0   ;;  %v614_v1 = vld [vmem:[#allocation5] sm:$0xff]   ;;  %vm80_vm1 = vcmask 1040384  }
  0x37   :  { %538 = vmatprep.subr.bf16.mxu0 %v739_v0  ;;  %542 = vmatprep.mubr.msk.bf16.mxu0 %vm740_vm0, %v739_v0  ;;  %v615_v2 = vld [vmem:[#allocation5 + $0x8] ss:$0 sps:$4 sm:$0x11]   ;;  %v616_v3 = vld [vmem:[#allocation7] sm:$0xff]   ;;  %v617_v5 = vld [vmem:[#allocation7 + $0x8] sm:$0xff]   ;;  %vm76_vm2 = vcmask 146432  }
  0x38   :  { %546 = vmatprep.subr.bf16.mxu1 %v739_v0  ;;  %562 = vmatprep.mubr.msk.bf16.mxu1 %vm740_vm0, %v739_v0  ;;  %v82_v4 = vsel %vm80_vm1, %v615_v2, 0  ;;  %v58_v6 = vld [vmem:[#allocation2] sm:$0xf]  ;;  %v619_v8 = vld [vmem:[#allocation7 + $0x18] sm:$0xff]   ;;  %v620_v9 = vld [vmem:[#allocation7 + $0x20] sm:$0xff]   ;;  %s741_s6 = smov [#allocation8]  }
  0x39   :  { %539 = vmatpush3.bf16.msra.mxu0 %v614_v1  ;;  %547 = vmatpush3.bf16.msra.mxu1 %v616_v3  ;;  %v618_v7 = vld [vmem:[#allocation7 + $0x10] sm:$0xff]   ;;  %v621_v10 = vld [vmem:[#allocation7 + $0x28] sm:$0xff]   ;;  %v623_v12 = vld [vmem:[#allocation7 + $0x38] sm:$0xff]   ;;  %s467_s7 = sshll.u32 %s741_s6, 4  ;;  %s468_s7 = int_to_ptr.vmem [resolvable:$true] %s467_s7 }
  0x3a   :  { %540 = vmatprep.subr.bf16.mxu0 %v739_v0  ;;  %548 = vmatprep.subr.bf16.mxu1 %v739_v0  ;;  %v622_v11 = vld [vmem:[#allocation7 + $0x30] sm:$0xff]   ;;  %v624_v13 = vld [vmem:[#allocation7 + $0x40] sm:$0xff]   ;;  %v625_v14 = vld [vmem:[#allocation7 + $0x48] sm:$0xff]   ;;  %s706_s8 = scalar_lea.vmem %s468_s7, 64  ;;  %p711_p11 = scmp.lt.s32.totalorder %s468_s7, %s468_s7 }
  0x3b   :  { %v626_v15 = vld [vmem:[#allocation7 + $0x50] sm:$0xff]   ;;  %v627_v16 = vld [vmem:[#allocation7 + $0x58] sm:$0xff]   ;;  %v628_v17 = vld [vmem:[#allocation7 + $0x60] sm:$0xff]   ;;  %p707_p10 = scmp.ne.s32.totalorder %s468_s7, %s706_s8  ;;  %p712_p12 = scmp.lt.s32.totalorder %s706_s8, %s706_s8 }
  0x3c   :  { %v629_v18 = vld [vmem:[#allocation7 + $0x68] sm:$0xff]   ;;  %v630_v27 = vld [vmem:[#allocation7 + $0x70] sm:$0xff]   ;;  %v631_v28 = vld [vmem:[#allocation7 + $0x78] sm:$0xff]  }
  0x3d   :  { %541 = vmatpush3.bf16.msra.mxu0 %v82_v4  ;;  %549 = vmatpush3.bf16.msra.mxu1 %v617_v5  ;;  %v477_v19 = vld [vmem:[%s870_s3] ss:$0 sm:$0xff]  ;;  %v632_v29 = vld [vmem:[#allocation7 + $0x80] sm:$0xff]   ;;  %v634_v31 = vld [vmem:[#allocation7 + $0x90] sm:$0xff]   ;;  %p713_p13 = por %p712_p12, %p711_p11 }
  0x3e   :  { %566 = vmatprep.subr.bf16.mxu0 %v739_v0  ;;  %550 = vmatprep.subr.bf16.mxu1 %v739_v0  ;;  %v633_v30 = vld [vmem:[#allocation7 + $0x88] sm:$0xff]   ;;  %v635_v32 = vld [vmem:[#allocation7 + $0x98] sm:$0xff]   ;;  %v636_v33 = vld [vmem:[#allocation7 + $0xa0] sm:$0xff]  }
  0x3f   :  { %v637_v34 = vld [vmem:[#allocation7 + $0xa8] sm:$0xff]   ;;  %v638_v43 = vld [vmem:[#allocation7 + $0xb0] sm:$0xff]   ;;  %v639_v44 = vld [vmem:[#allocation7 + $0xb8] sm:$0xff]   ;;  %p714_p0 = pnand %p713_p13, %p707_p10 }
  0x40   :  { %543 = vmatmul.mubr.msk.bf16.vlgmr.msra.gmra.mrb[0].mxu0 %vm76_vm2, %v58_v6  ;;  %v481_v35 = vld [vmem:[%s870_s3 + $0x1] ss:$0 sm:$0xff]  ;;  %v490_v45 = vld [vmem:[%s870_s3 + $0x2] ss:$0 sm:$0xff]  ;;  %v499_v53 = vld [vmem:[%s870_s3 + $0x3] ss:$0 sm:$0xff] }
  0x41   :  { %582 = vmatprep.mubr.msk.bf16.mxu0 %vm740_vm0, %v739_v0  ;;  %551 = vmatpush3.bf16.msra.mxu1 %v618_v7 }
  0x42   :  { %552 = vmatprep.subr.bf16.mxu1 %v739_v0  ;;  %567 = vmatpush3.bf16.msra.mxu0 %v624_v13 }
  0x43   :  { %568 = vmatprep.subr.bf16.mxu0 %v739_v0 }
  0x45   :  { %553 = vmatpush3.bf16.msra.mxu1 %v619_v8 }
  0x46   :  { %554 = vmatprep.subr.bf16.mxu1 %v739_v0  ;;  %569 = vmatpush3.bf16.msra.mxu0 %v625_v14 }
  0x47   :  { %570 = vmatprep.subr.bf16.mxu0 %v739_v0 }
  0x49   :  { %555 = vmatpush3.bf16.msra.mxu1 %v620_v9 }
  0x4a   :  { %556 = vmatprep.subr.bf16.mxu1 %v739_v0  ;;  %571 = vmatpush3.bf16.msra.mxu0 %v626_v15 }
  0x4b   :  { %572 = vmatprep.subr.bf16.mxu0 %v739_v0 }
  0x4d   :  { %557 = vmatpush3.bf16.msra.mxu1 %v621_v10 }
  0x4e   :  { %558 = vmatprep.subr.bf16.mxu1 %v739_v0  ;;  %573 = vmatpush3.bf16.msra.mxu0 %v627_v16 }
  0x4f   :  { %574 = vmatprep.subr.bf16.mxu0 %v739_v0 }
  0x51   :  { %559 = vmatpush3.bf16.msra.mxu1 %v622_v11 }
  0x52   :  { %560 = vmatprep.subr.bf16.mxu1 %v739_v0  ;;  %575 = vmatpush3.bf16.msra.mxu0 %v628_v17 }
  0x53   :  { %576 = vmatprep.subr.bf16.mxu0 %v739_v0 }
  0x55   :  { %561 = vmatpush3.bf16.msra.mxu1 %v623_v12 }
  0x56   :  { %586 = vmatprep.subr.bf16.mxu1 %v739_v0  ;;  %577 = vmatpush3.bf16.msra.mxu0 %v629_v18 }
  0x57   :  { %578 = vmatprep.subr.bf16.mxu0 %v739_v0 }
  0x5a   :  { %579 = vmatpush3.bf16.msra.mxu0 %v630_v27 }
  0x5b   :  { %580 = vmatprep.subr.bf16.mxu0 %v739_v0 }
  0x5e   :  { %581 = vmatpush3.bf16.msra.mxu0 %v631_v28 }
 0x113   :  { %v118_v20 = vpop.f32.mrb[0].mxu0 }
 0x114   :  { %v119_v21 = vadd.f32 %v477_v19, %v118_v20  ;;  %v544_v22 = vpop.f32.mrb[1].mxu0 }
 0x115   :  { %v121_v23 = vpop.f32.mrb[2].mxu0 }
 0x116   :  { %v124_v24 = vmax.f32 %v119_v21, 0.0  ;;  %v545_v25 = vpop.f32.mrb[3].mxu0 }
 0x118   :  { %v125_v26 = vpack.c.bf16 %v124_v24, %v124_v24 }
 0x11a   :  { %563 = vmatmul.mubr.bf16.vlgmr.msra.gmra.mrb[0].mxu1 %v125_v26 }
 0x11b   :  { %602 = vmatprep.mubr.msk.bf16.mxu1 %vm740_vm0, %v739_v0  ;;  %587 = vmatpush3.bf16.msra.mxu1 %v632_v29 }
 0x11c   :  { %588 = vmatprep.subr.bf16.mxu1 %v739_v0 }
 0x11f   :  { %589 = vmatpush3.bf16.msra.mxu1 %v633_v30 }
 0x120   :  { %590 = vmatprep.subr.bf16.mxu1 %v739_v0 }
 0x123   :  { %591 = vmatpush3.bf16.msra.mxu1 %v634_v31 }
 0x124   :  { %592 = vmatprep.subr.bf16.mxu1 %v739_v0 }
 0x127   :  { %593 = vmatpush3.bf16.msra.mxu1 %v635_v32 }
 0x128   :  { %594 = vmatprep.subr.bf16.mxu1 %v739_v0 }
 0x12b   :  { %595 = vmatpush3.bf16.msra.mxu1 %v636_v33 }
 0x12c   :  { %596 = vmatprep.subr.bf16.mxu1 %v739_v0 }
 0x12f   :  { %597 = vmatpush3.bf16.msra.mxu1 %v637_v34 }
 0x130   :  { %598 = vmatprep.subr.bf16.mxu1 %v739_v0 }
 0x133   :  { %599 = vmatpush3.bf16.msra.mxu1 %v638_v43 }
 0x134   :  { %600 = vmatprep.subr.bf16.mxu1 %v739_v0 }
 0x137   :  { %601 = vmatpush3.bf16.msra.mxu1 %v639_v44 }
 0x1ed   :  { %v229_v36 = vpop.f32.mrb[0].mxu1 }
 0x1ee   :  { %v230_v37 = vadd.f32 %v481_v35, %v229_v36  ;;  %v564_v38 = vpop.f32.mrb[1].mxu1 }
 0x1ef   :  { %v232_v39 = vpop.f32.mrb[2].mxu1 }
 0x1f0   :  { %v235_v40 = vmax.f32 %v230_v37, 0.0  ;;  %v565_v41 = vpop.f32.mrb[3].mxu1 }
 0x1f2   :  { %v236_v42 = vpack.c.bf16 %v235_v40, %v235_v40 }
 0x1f4   :  { %583 = vmatmul.mubr.bf16.vlgmr.msra.gmra.mrb[4].mxu0 %v236_v42 }
 0x2c7   :  { %v341_v46 = vpop.f32.mrb[4].mxu0 }
 0x2c8   :  { %v342_v47 = vadd.f32 %v490_v45, %v341_v46  ;;  %v584_v48 = vpop.f32.mrb[5].mxu0 }
 0x2c9   :  { %v344_v49 = vpop.f32.mrb[6].mxu0 }
 0x2ca   :  { %v347_v50 = vmax.f32 %v342_v47, 0.0  ;;  %v585_v51 = vpop.f32.mrb[7].mxu0 }
 0x2cc   :  { %v348_v52 = vpack.c.bf16 %v347_v50, %v347_v50 }
 0x2ce   :  { %603 = vmatmul.mubr.bf16.vlgmr.msra.gmra.mrb[4].mxu1 %v348_v52 }
 0x3a1   :  { %v453_v54 = vpop.f32.mrb[4].mxu1 }
 0x3a2   :  { %v454_v55 = vadd.f32 %v499_v53, %v453_v54  ;;  %v604_v56 = vpop.f32.mrb[5].mxu1 }
 0x3a3   :  { %v456_v57 = vpop.f32.mrb[6].mxu1 }
 0x3a4   :  { %v459_v58 = vpack.c.bf16 %v454_v55, %v454_v55  ;;  %v605_v59 = vpop.f32.mrb[7].mxu1 }
 0x3a6   :  { %460 = vst [vmem:[#allocation8] sm:$0xf] %v459_v58 }
 0x3a7   :  { %717 = shalt.err (!%p714_p0)
}
 0x3a8   :  { %s718_s3 = scalar_lea.hbm %s871_s4, 64 }
 0x3a9   :  { %p719_p1 = scmp.ne.s32.totalorder %s871_s4, %s718_s3  ;;  %p722_p2 = scmp.lt.u32.totalorder %s718_s3, %s871_s4 }
 0x3ab   :  { %p724_p3 = pnand %p722_p2, %p719_p1 }
 0x3ad   :  { %727 = shalt.err (!%p724_p3)
}
 0x3ae   :  { %470 = dma.vmem_to_hbm [thread:$0]  %s468_s7, 64, %s871_s4, [#allocation4]  }
 0x3af   :  { %732 = dma.done.wait [#allocation4], 64  }
 0x3b0   :  { %733 = vsyncadd [#allocation4], 4294967232 }
 0x3b1   :  { %474 = vsyncpa [#allocation3], 1 }
 0x3b2   :  { %475 = vsyncpa [#allocation6], 1 }
 0x3b3   :  { %476 = vsyncpa [#allocation4], 1 }

</bundles_post_ra>
